<compile_context>
chip_gen: v5e
topology: v5e:2x2
jax: 0.10.0
libtpu: 0.0.40
codegen_flags: <defaults>
</compile_context>

<pallas_src>
import jax
import jax.numpy as jnp
import numpy as np
from jax.experimental import pallas as pl
from jax.experimental.pallas import tpu as pltpu


def _pos_embed_kernel(idx_ref, gscale_ref, lscale_ref,
                      x_ref, local_ref, global_ref, out_ref):
    # idx_ref:    SMEM (B, T) int32  -- flat index (row*Mt + col) into global table
    # gscale_ref: SMEM (B, T) f32    -- tanh(gate) * valid
    # lscale_ref: SMEM (1,)   f32    -- 1 - tanh(gate)
    # x_ref/out_ref: VMEM (T, S, D)  (leading batch dim squeezed by BlockSpec)
    # local_ref:  VMEM (S, D)
    # global_ref: VMEM (Mt*Mt, S, D) -- fully resident
    b = pl.program_id(0)
    lscale = lscale_ref[0]

    # Local (ungated-complement) term applied to every tile at once.
    base = x_ref[...].astype(jnp.float32) + local_ref[...].astype(jnp.float32) * lscale

    n_tiles = x_ref.shape[0]
    # Small static unroll over tiles: dynamic gather of the resident global table
    # on its (untiled) leading axis, scaled by the prefetched gate*valid scalar.
    for t in range(n_tiles):
        g = global_ref[idx_ref[b, t]].astype(jnp.float32)          # (S, D)
        out_ref[t] = (base[t] + g * gscale_ref[b, t]).astype(out_ref.dtype)


def tiled_token_positional_embedding(x, aspect_ratio, local_pe, global_pe, gate):
    """x: (B, T, S, D), aspect_ratio: (B, 2) int32,
    local_pe: (S, D), global_pe: (Mt, Mt, S, D), gate: (1,)."""
    B, T, S, D = x.shape
    Mt = global_pe.shape[0]

    # ---- plain-JAX glue: build scalar-prefetch tables (all gate math folded in) ----
    n_h = aspect_ratio[:, 0].astype(jnp.int32)
    n_w = aspect_ratio[:, 1].astype(jnp.int32)
    n_valid = n_h * n_w                                           # (B,)
    t_idx = jnp.arange(T, dtype=jnp.int32)[None, :]               # (1, T)
    valid = t_idx < n_valid[:, None]                              # (B, T) bool
    safe_w = jnp.maximum(n_w, 1)[:, None]
    row = jnp.where(valid, t_idx // safe_w, 0)
    col = jnp.where(valid, t_idx % safe_w, 0)
    idx = (row * Mt + col).astype(jnp.int32)                      # (B, T)

    gt = jnp.tanh(gate.astype(jnp.float32))[0]
    gscale = jnp.where(valid, gt, jnp.float32(0.0)).astype(jnp.float32)   # (B, T)
    lscale = jnp.reshape(1.0 - gt, (1,)).astype(jnp.float32)              # (1,)

    # Flatten the (Mt, Mt) tile grid so the in-kernel gather is a single
    # dynamic index on the leading (untiled) axis of a resident VMEM block.
    global_flat = global_pe.reshape(Mt * Mt, S, D)

    grid_spec = pltpu.PrefetchScalarGridSpec(
        num_scalar_prefetch=3,
        grid=(B,),
        in_specs=[
            # x: one full (T, S, D) slab per batch (leading dim squeezed).
            pl.BlockSpec((None, T, S, D), lambda b, idx, gs, ls: (b, 0, 0, 0)),
            # local positional embedding: resident, same block every step.
            pl.BlockSpec((S, D), lambda b, idx, gs, ls: (0, 0)),
            # global positional embedding: fully resident, constant block.
            pl.BlockSpec((Mt * Mt, S, D), lambda b, idx, gs, ls: (0, 0, 0)),
        ],
        out_specs=pl.BlockSpec((None, T, S, D), lambda b, idx, gs, ls: (b, 0, 0, 0)),
    )

    return pl.pallas_call(
        _pos_embed_kernel,
        out_shape=jax.ShapeDtypeStruct(x.shape, x.dtype),
        grid_spec=grid_spec,
        compiler_params=pltpu.CompilerParams(
            # B is independent work -> shards across the two TensorCores on v7x.
            dimension_semantics=("parallel",)),
        # NOTE: total VMEM here is ~1 MB; no vmem_limit_bytes override needed.
        # TODO(synk): at production vision-encoder sizes (S~1601, D~1280), tile T
        # per step and raise vmem_limit_bytes on v7x's 64 MiB VMEM.
    )(idx, gscale, lscale, x, local_pe, global_flat)


def reference(x, aspect_ratio, local_pe, global_pe, gate):
    """Pure-JAX port of the PyTorch forward for verification."""
    B, T, S, D = x.shape
    gt = jnp.tanh(gate.astype(jnp.float32))[0]
    out = x + local_pe[None, None] * (1.0 - gt)
    ar = np.asarray(aspect_ratio)
    rows = []
    for b in range(B):
        nh, nw = int(ar[b, 0]), int(ar[b, 1])
        nnp = nh * nw
        pe = global_pe[:nh, :nw].reshape(nnp, S, D) * gt
        xb = out[b]
        xb = xb.at[:nnp].add(pe)
        rows.append(xb)
    return jnp.stack(rows, axis=0)


if __name__ == "__main__":
    # Module hyperparameters (small, consistent with __init__):
    max_num_tiles = 4
    embed_dim = 128
    tile_size = 16
    patch_size = 4
    patch_grid_size = tile_size // patch_size
    n_tokens_per_tile = patch_grid_size ** 2 + 1        # 17

    B = 2           # bsz * n_imgs
    n_tiles = 4     # <= max_num_tiles

    key = jax.random.PRNGKey(0)
    k_x, k_loc, k_glob = jax.random.split(key, 3)
    scale = embed_dim ** (-0.5)

    x = jax.random.normal(k_x, (B, n_tiles, n_tokens_per_tile, embed_dim), jnp.float32)
    local_pe = scale * jax.random.normal(
        k_loc, (n_tokens_per_tile, embed_dim), jnp.float32)
    global_pe = scale * jax.random.normal(
        k_glob, (max_num_tiles, max_num_tiles, n_tokens_per_tile, embed_dim), jnp.float32)
    # NOTE: torch __init__ sets gate = zeros(1); we use a deterministic nonzero value
    # so both the local and global embedding paths are exercised in the test.
    gate = jnp.array([0.3], dtype=jnp.float32)

    # aspect_ratio[b] = (n_tiles_h, n_tiles_w), with n_h * n_w <= n_tiles
    aspect_ratio = jnp.array([[2, 2], [1, 3]], dtype=jnp.int32)

    out = tiled_token_positional_embedding(x, aspect_ratio, local_pe, global_pe, gate)
    out = jax.block_until_ready(out)

    ref = reference(x, aspect_ratio, local_pe, global_pe, gate)
    np.testing.assert_allclose(np.asarray(out), np.asarray(ref), rtol=1e-5, atol=1e-5)

    print("KERNEL_OK")
</pallas_src>

<mosaic_0001>
module attributes {stable_mosaic.version = 11 : i64} {
  func.func @_pos_embed_kernel(%arg0: i32, %arg1: memref<2x4xi32, #tpu.memory_space<smem>>, %arg2: memref<2x4xf32, #tpu.memory_space<smem>>, %arg3: memref<1xf32, #tpu.memory_space<smem>>, %arg4: memref<1x4x17x128xf32, #tpu.memory_space<vmem>>, %arg5: memref<17x128xf32, #tpu.memory_space<vmem>>, %arg6: memref<16x17x128xf32, #tpu.memory_space<vmem>>, %arg7: memref<1x4x17x128xf32, #tpu.memory_space<vmem>>) attributes {dimension_semantics = [#tpu.dimension_semantics<parallel>], iteration_bounds = array<i64: 2>, scalar_prefetch = 3 : i64, scratch_operands = 0 : i64, tpu.core_type = #tpu.core_type<tc>, window_params = [{transform_indices = @transform_0, window_bounds = array<i64: 1, 4, 17, 128>}, {pipeline_mode = #tpu.pipeline_mode<synchronous>, transform_indices = @transform_1, window_bounds = array<i64: 17, 128>}, {pipeline_mode = #tpu.pipeline_mode<synchronous>, transform_indices = @transform_2, window_bounds = array<i64: 16, 17, 128>}, {transform_indices = @transform_3, window_bounds = array<i64: 1, 4, 17, 128>}]} {
    %c0 = arith.constant 0 : index
    %0 = memref.load %arg3[%c0] : memref<1xf32, #tpu.memory_space<smem>>
    %c0_0 = arith.constant 0 : index
    %c0_1 = arith.constant 0 : index
    %c0_2 = arith.constant 0 : index
    %c0_3 = arith.constant 0 : index
    %1 = vector.load %arg4[%c0_0, %c0_1, %c0_2, %c0_3] : memref<1x4x17x128xf32, #tpu.memory_space<vmem>>, vector<1x4x17x128xf32>
    %2 = vector.shape_cast %1 : vector<1x4x17x128xf32> to vector<4x17x128xf32>
    %c0_4 = arith.constant 0 : index
    %c0_5 = arith.constant 0 : index
    %3 = vector.load %arg5[%c0_4, %c0_5] : memref<17x128xf32, #tpu.memory_space<vmem>>, vector<17x128xf32>
    %4 = vector.broadcast %0 : f32 to vector<17x128xf32>
    %5 = arith.mulf %3, %4 : vector<17x128xf32>
    %6 = vector.shape_cast %5 : vector<17x128xf32> to vector<1x17x128xf32>
    %7 = vector.broadcast %6 : vector<1x17x128xf32> to vector<4x17x128xf32>
    %8 = arith.addf %2, %7 : vector<4x17x128xf32>
    %9 = arith.index_cast %arg0 : i32 to index
    %c0_6 = arith.constant 0 : index
    %10 = memref.load %arg1[%9, %c0_6] : memref<2x4xi32, #tpu.memory_space<smem>>
    %11 = arith.index_cast %10 : i32 to index
    %c0_7 = arith.constant 0 : index
    %c0_8 = arith.constant 0 : index
    %12 = vector.load %arg6[%11, %c0_7, %c0_8] : memref<16x17x128xf32, #tpu.memory_space<vmem>>, vector<1x17x128xf32>
    %13 = vector.shape_cast %12 : vector<1x17x128xf32> to vector<17x128xf32>
    %14 = vector.extract_strided_slice %8 {offsets = [0, 0, 0], sizes = [1, 17, 128], strides = [1, 1, 1]} : vector<4x17x128xf32> to vector<1x17x128xf32>
    %15 = vector.shape_cast %14 : vector<1x17x128xf32> to vector<17x128xf32>
    %16 = arith.index_cast %arg0 : i32 to index
    %c0_9 = arith.constant 0 : index
    %17 = memref.load %arg2[%16, %c0_9] : memref<2x4xf32, #tpu.memory_space<smem>>
    %18 = vector.broadcast %17 : f32 to vector<17x128xf32>
    %19 = arith.mulf %13, %18 : vector<17x128xf32>
    %20 = arith.addf %15, %19 : vector<17x128xf32>
    %c0_10 = arith.constant 0 : index
    %c0_11 = arith.constant 0 : index
    %c0_12 = arith.constant 0 : index
    %c0_13 = arith.constant 0 : index
    %21 = vector.load %arg7[%c0_10, %c0_11, %c0_12, %c0_13] : memref<1x4x17x128xf32, #tpu.memory_space<vmem>>, vector<1x1x17x128xf32>
    %22 = vector.shape_cast %21 : vector<1x1x17x128xf32> to vector<17x128xf32>
    %23 = vector.shape_cast %20 : vector<17x128xf32> to vector<1x1x17x128xf32>
    tpu.vector_store %arg7[%c0_10, %c0_11, %c0_12, %c0_13], %23 {strides = array<i32>} : memref<1x4x17x128xf32, #tpu.memory_space<vmem>>, vector<1x1x17x128xf32>,
    %24 = arith.index_cast %arg0 : i32 to index
    %c1 = arith.constant 1 : index
    %25 = memref.load %arg1[%24, %c1] : memref<2x4xi32, #tpu.memory_space<smem>>
    %26 = arith.index_cast %25 : i32 to index
    %c0_14 = arith.constant 0 : index
    %c0_15 = arith.constant 0 : index
    %27 = vector.load %arg6[%26, %c0_14, %c0_15] : memref<16x17x128xf32, #tpu.memory_space<vmem>>, vector<1x17x128xf32>
    %28 = vector.shape_cast %27 : vector<1x17x128xf32> to vector<17x128xf32>
    %29 = vector.extract_strided_slice %8 {offsets = [1, 0, 0], sizes = [1, 17, 128], strides = [1, 1, 1]} : vector<4x17x128xf32> to vector<1x17x128xf32>
    %30 = vector.shape_cast %29 : vector<1x17x128xf32> to vector<17x128xf32>
    %31 = arith.index_cast %arg0 : i32 to index
    %c1_16 = arith.constant 1 : index
    %32 = memref.load %arg2[%31, %c1_16] : memref<2x4xf32, #tpu.memory_space<smem>>
    %33 = vector.broadcast %32 : f32 to vector<17x128xf32>
    %34 = arith.mulf %28, %33 : vector<17x128xf32>
    %35 = arith.addf %30, %34 : vector<17x128xf32>
    %c0_17 = arith.constant 0 : index
    %c1_18 = arith.constant 1 : index
    %c0_19 = arith.constant 0 : index
    %c0_20 = arith.constant 0 : index
    %36 = vector.load %arg7[%c0_17, %c1_18, %c0_19, %c0_20] : memref<1x4x17x128xf32, #tpu.memory_space<vmem>>, vector<1x1x17x128xf32>
    %37 = vector.shape_cast %36 : vector<1x1x17x128xf32> to vector<17x128xf32>
    %38 = vector.shape_cast %35 : vector<17x128xf32> to vector<1x1x17x128xf32>
    tpu.vector_store %arg7[%c0_17, %c1_18, %c0_19, %c0_20], %38 {strides = array<i32>} : memref<1x4x17x128xf32, #tpu.memory_space<vmem>>, vector<1x1x17x128xf32>,
    %39 = arith.index_cast %arg0 : i32 to index
    %c2 = arith.constant 2 : index
    %40 = memref.load %arg1[%39, %c2] : memref<2x4xi32, #tpu.memory_space<smem>>
    %41 = arith.index_cast %40 : i32 to index
    %c0_21 = arith.constant 0 : index
    %c0_22 = arith.constant 0 : index
    %42 = vector.load %arg6[%41, %c0_21, %c0_22] : memref<16x17x128xf32, #tpu.memory_space<vmem>>, vector<1x17x128xf32>
    %43 = vector.shape_cast %42 : vector<1x17x128xf32> to vector<17x128xf32>
    %44 = vector.extract_strided_slice %8 {offsets = [2, 0, 0], sizes = [1, 17, 128], strides = [1, 1, 1]} : vector<4x17x128xf32> to vector<1x17x128xf32>
    %45 = vector.shape_cast %44 : vector<1x17x128xf32> to vector<17x128xf32>
    %46 = arith.index_cast %arg0 : i32 to index
    %c2_23 = arith.constant 2 : index
    %47 = memref.load %arg2[%46, %c2_23] : memref<2x4xf32, #tpu.memory_space<smem>>
    %48 = vector.broadcast %47 : f32 to vector<17x128xf32>
    %49 = arith.mulf %43, %48 : vector<17x128xf32>
    %50 = arith.addf %45, %49 : vector<17x128xf32>
    %c0_24 = arith.constant 0 : index
    %c2_25 = arith.constant 2 : index
    %c0_26 = arith.constant 0 : index
    %c0_27 = arith.constant 0 : index
    %51 = vector.load %arg7[%c0_24, %c2_25, %c0_26, %c0_27] : memref<1x4x17x128xf32, #tpu.memory_space<vmem>>, vector<1x1x17x128xf32>
    %52 = vector.shape_cast %51 : vector<1x1x17x128xf32> to vector<17x128xf32>
    %53 = vector.shape_cast %50 : vector<17x128xf32> to vector<1x1x17x128xf32>
    tpu.vector_store %arg7[%c0_24, %c2_25, %c0_26, %c0_27], %53 {strides = array<i32>} : memref<1x4x17x128xf32, #tpu.memory_space<vmem>>, vector<1x1x17x128xf32>,
    %54 = arith.index_cast %arg0 : i32 to index
    %c3 = arith.constant 3 : index
    %55 = memref.load %arg1[%54, %c3] : memref<2x4xi32, #tpu.memory_space<smem>>
    %56 = arith.index_cast %55 : i32 to index
    %c0_28 = arith.constant 0 : index
    %c0_29 = arith.constant 0 : index
    %57 = vector.load %arg6[%56, %c0_28, %c0_29] : memref<16x17x128xf32, #tpu.memory_space<vmem>>, vector<1x17x128xf32>
    %58 = vector.shape_cast %57 : vector<1x17x128xf32> to vector<17x128xf32>
    %59 = vector.extract_strided_slice %8 {offsets = [3, 0, 0], sizes = [1, 17, 128], strides = [1, 1, 1]} : vector<4x17x128xf32> to vector<1x17x128xf32>
    %60 = vector.shape_cast %59 : vector<1x17x128xf32> to vector<17x128xf32>
    %61 = arith.index_cast %arg0 : i32 to index
    %c3_30 = arith.constant 3 : index
    %62 = memref.load %arg2[%61, %c3_30] : memref<2x4xf32, #tpu.memory_space<smem>>
    %63 = vector.broadcast %62 : f32 to vector<17x128xf32>
    %64 = arith.mulf %58, %63 : vector<17x128xf32>
    %65 = arith.addf %60, %64 : vector<17x128xf32>
    %c0_31 = arith.constant 0 : index
    %c3_32 = arith.constant 3 : index
    %c0_33 = arith.constant 0 : index
    %c0_34 = arith.constant 0 : index
    %66 = vector.load %arg7[%c0_31, %c3_32, %c0_33, %c0_34] : memref<1x4x17x128xf32, #tpu.memory_space<vmem>>, vector<1x1x17x128xf32>
    %67 = vector.shape_cast %66 : vector<1x1x17x128xf32> to vector<17x128xf32>
    %68 = vector.shape_cast %65 : vector<17x128xf32> to vector<1x1x17x128xf32>
    tpu.vector_store %arg7[%c0_31, %c3_32, %c0_33, %c0_34], %68 {strides = array<i32>} : memref<1x4x17x128xf32, #tpu.memory_space<vmem>>, vector<1x1x17x128xf32>,
    return
  }
  func.func @transform_0(%arg0: i32, %arg1: memref<2x4xi32, #tpu.memory_space<smem>>, %arg2: memref<2x4xf32, #tpu.memory_space<smem>>, %arg3: memref<1xf32, #tpu.memory_space<smem>>) -> (i32, i32, i32, i32) {
    %c0_i32 = arith.constant 0 : i32
    %c0_i32_0 = arith.constant 0 : i32
    %c0_i32_1 = arith.constant 0 : i32
    %c0_i32_2 = arith.constant 0 : i32
    return %arg0, %c0_i32, %c0_i32_0, %c0_i32_1 : i32, i32, i32, i32
  }
  func.func @transform_1(%arg0: i32, %arg1: memref<2x4xi32, #tpu.memory_space<smem>>, %arg2: memref<2x4xf32, #tpu.memory_space<smem>>, %arg3: memref<1xf32, #tpu.memory_space<smem>>) -> (i32, i32) {
    %c0_i32 = arith.constant 0 : i32
    %c0_i32_0 = arith.constant 0 : i32
    %c0_i32_1 = arith.constant 0 : i32
    return %c0_i32, %c0_i32_0 : i32, i32
  }
  func.func @transform_2(%arg0: i32, %arg1: memref<2x4xi32, #tpu.memory_space<smem>>, %arg2: memref<2x4xf32, #tpu.memory_space<smem>>, %arg3: memref<1xf32, #tpu.memory_space<smem>>) -> (i32, i32, i32) {
    %c0_i32 = arith.constant 0 : i32
    %c0_i32_0 = arith.constant 0 : i32
    %c0_i32_1 = arith.constant 0 : i32
    %c0_i32_2 = arith.constant 0 : i32
    return %c0_i32, %c0_i32_0, %c0_i32_1 : i32, i32, i32
  }
  func.func @transform_3(%arg0: i32, %arg1: memref<2x4xi32, #tpu.memory_space<smem>>, %arg2: memref<2x4xf32, #tpu.memory_space<smem>>, %arg3: memref<1xf32, #tpu.memory_space<smem>>) -> (i32, i32, i32, i32) {
    %c0_i32 = arith.constant 0 : i32
    %c0_i32_0 = arith.constant 0 : i32
    %c0_i32_1 = arith.constant 0 : i32
    %c0_i32_2 = arith.constant 0 : i32
    return %arg0, %c0_i32, %c0_i32_0, %c0_i32_1 : i32, i32, i32, i32
  }
}

</mosaic_0001>

<bundles_post_ra>
// kernel: tpu_custom_call.1
= control target key start
LH: loop header
LB: loop body
LE: loop exit
PB: predicated region body
PF: predicated region fallthrough
CT: control target
= control target key end

     0   :  { %s422_s27 = smov [#allocation3]   ;;  %s423_s28 = smov [#allocation4]   ;;  %s575_s0 = inlined_call_operand.vmem [shape: s32[2,4], index: 0, kind: input, shape index: {}]   ;;  %s576_s3 = inlined_call_operand.vmem [shape: f32[2,4,17,128], index: 3, kind: input, shape index: {}]   ;;  %s577_s4 = inlined_call_operand.vmem [shape: f32[17,128], index: 4, kind: input, shape index: {}]   ;;  %s578_s5 = inlined_call_operand.vmem [shape: f32[16,17,128], index: 5, kind: input, shape index: {}]   ;;  %s579_s6 = inlined_call_operand.vmem [shape: f32[2,4,17,128], index: 6, kind: output, shape index: {}]   ;;  %s580_s1 = inlined_call_operand.vmem [shape: f32[2,4], index: 1, kind: input, shape index: {}]   ;;  %s581_s2 = inlined_call_operand.<no memory space> [shape: f32[1], index: 2, kind: input, shape index: {}]  }
   0x1   :  { %s12_s23 = sshll.u32 %s575_s0, 4  ;;  %s17_s26 = sshll.u32 %s580_s1, 4  ;;  %s13_s23 = int_to_ptr.vmem [resolvable:$true] %s12_s23  ;;  %s18_s26 = int_to_ptr.vmem [resolvable:$true] %s17_s26 }
   0x2   :  { %15 = dma.vmem_to_smem %s13_s23, 32, %s422_s27, [#allocation2] }
   0x3   :  { %20 = dma.vmem_to_smem %s18_s26, 32, %s423_s28, [#allocation2] }
   0x4   :  { %21 = sst [smem:[#allocation5]] %s581_s2 }
   0x5   :  { %416 = dma.done.wait [#allocation2], 64 }
   0x6   :  { %417 = vsyncadd [#allocation2], 4294967232 }
   0x7   :  { %24 = sfence }
   0x8   :  { %s468_s7 = smov 0  }
   0x9 LB: > { %s358_s0 = sadd.s32 4294967295, %s420_s7   ;;  %p362_p0 = scmp.ge.s32.totalorder %s420_s7, 1  ;;  %s420_s7 = sphi %s468_s7, %s30_s7  }
   0xa   : > { %p154_p1 = scmp.lt.s32.totalorder %s420_s7, 3 }
   0xc   : > { %p155_p2 = pnand %p362_p0, %p154_p1 }
   0xd   : > { %p178_p3 = scmp.lt.s32.totalorder (!%p155_p2), %s358_s0, 1  ;;  %s188_s1 = sld [smem:[#allocation5]] (!%p155_p2) }
   0xe   : > { %158 = sbr.rel (%p155_p2) target bundleno = 42 (0x2a), region = 32  ;;  %s476_s2 = sshll.u32 (!%p155_p2), %s358_s0, 7 }
   0xf   : > { %s221_s8 = sld [smem:[#allocation3 + %s476_s2]] (!%p155_p2)  ;;  %s238_s9 = sadd.s32 (!%p155_p2), 1, %s476_s2 }
  0x10   : > { %s227_s13 = sld [smem:[#allocation4 + %s476_s2]] (!%p155_p2)  ;;  %s257_s19 = sadd.s32 (!%p155_p2), 2, %s476_s2 }
  0x11   : > { %s493_s18 = sld [smem:[#allocation3 + %s238_s9]] (!%p155_p2)  ;;  %s276_s24 = sadd.s32 (!%p155_p2), 3, %s476_s2 }
  0x12   : > { %s245_s23 = sld [smem:[#allocation4 + %s238_s9]] (!%p155_p2) }
  0x13   : > { %s583_s0 = smov (!%p178_p3, %s358_s0), 1  ;;  %v201_v0 = vld [vmem:[%s577_s4] sm:$0xff]  ;;  %v202_v1 = vld [vmem:[%s577_s4 + $0x8] sm:$0xff]  ;;  %v203_v2 = vld [vmem:[%s577_s4 + $0x10] sm:$0x1]  ;;  %v204_v3 = vstv %s188_s1  ;;  %s511_s25 = sld [smem:[#allocation3 + %s257_s19]] }
  0x14   : > { %s377_s10 = smul.u32 96, %s583_s0  ;;  %v205_v4 = vmul.f32 %v204_v3, %v201_v0  ;;  %v503_v5 = vmul.f32 %v204_v3, %v202_v1  ;;  %v505_v6 = vmul.f32 %v204_v3, %v203_v2  ;;  %s514_s27 = sld [smem:[#allocation4 + %s257_s19]] }
  0x15   : > { %s222_s26 = smul.u32 24, %s221_s8  ;;  %s516_s28 = sld [smem:[#allocation3 + %s276_s24]] }
  0x16   : > { %s501_s22 = scalar_lea.vmem %s576_s3, %s377_s10  ;;  %v228_v11 = vstv %s227_s13  ;;  %s527_s8 = sld [smem:[#allocation4 + %s276_s24]] }
  0x17   : > { %v189_v7 = vld [vmem:[%s501_s22] sm:$0xff]  ;;  %v190_v8 = vld [vmem:[%s501_s22 + $0x8] sm:$0xff]  ;;  %v191_v9 = vld [vmem:[%s501_s22 + $0x10] sm:$0x1]  ;;  %s223_s1 = scalar_lea.vmem %s578_s5, %s222_s26  ;;  %s240_s2 = smul.u32 24, %s493_s18 }
  0x18   : > { %v192_v10 = vld [vmem:[%s501_s22 + $0x18] sm:$0xff]  ;;  %v208_v12 = vadd.f32 %v205_v4, %v189_v7  ;;  %v209_v13 = vadd.f32 %v503_v5, %v190_v8  ;;  %v210_v14 = vadd.f32 %v505_v6, %v191_v9  ;;  %v193_v15 = vld [vmem:[%s501_s22 + $0x20] sm:$0xff]  ;;  %v194_v16 = vld [vmem:[%s501_s22 + $0x28] sm:$0x1]  ;;  %v246_v25 = vstv %s245_s23  ;;  %s540_s15 = scalar_lea.vmem %s579_s6, %s377_s10 }
  0x19   : > { %v195_v17 = vld [vmem:[%s501_s22 + $0x30] sm:$0xff]  ;;  %v224_v18 = vld [vmem:[%s223_s1] sm:$0xff]  ;;  %v225_v19 = vld [vmem:[%s223_s1 + $0x8] sm:$0xff]  ;;  %v211_v21 = vadd.f32 %v205_v4, %v192_v10  ;;  %s241_s12 = scalar_lea.vmem %s578_s5, %s240_s2  ;;  %v212_v30 = vadd.f32 %v503_v5, %v193_v15  ;;  %v213_v32 = vadd.f32 %v505_v6, %v194_v16  ;;  %s259_s16 = smul.u32 24, %s511_s25 }
  0x1a   : > { %v226_v20 = vld [vmem:[%s223_s1 + $0x10] sm:$0x1]  ;;  %v229_v22 = vmul.f32 %v228_v11, %v224_v18  ;;  %v230_v23 = vmul.f32 %v228_v11, %v225_v19  ;;  %v196_v26 = vld [vmem:[%s501_s22 + $0x38] sm:$0xff]  ;;  %v197_v27 = vld [vmem:[%s501_s22 + $0x40] sm:$0x1]  ;;  %v214_v34 = vadd.f32 %v205_v4, %v195_v17  ;;  %v265_v41 = vstv %s514_s27 }
  0x1b   : > { %v231_v24 = vmul.f32 %v228_v11, %v226_v20  ;;  %v198_v28 = vld [vmem:[%s501_s22 + $0x48] sm:$0xff]  ;;  %v242_v29 = vld [vmem:[%s241_s12] sm:$0xff]  ;;  %v244_v33 = vld [vmem:[%s241_s12 + $0x10] sm:$0x1]  ;;  %s260_s17 = scalar_lea.vmem %s578_s5, %s259_s16  ;;  %v215_v42 = vadd.f32 %v503_v5, %v196_v26  ;;  %s278_s18 = smul.u32 24, %s516_s28  ;;  %v216_v48 = vadd.f32 %v505_v6, %v197_v27 }
  0x1c   : > { %v243_v31 = vld [vmem:[%s241_s12 + $0x8] sm:$0xff]  ;;  %v232_v35 = vadd.f32 %v229_v22, %v208_v12  ;;  %v233_v36 = vadd.f32 %v230_v23, %v209_v13  ;;  %v247_v38 = vmul.f32 %v246_v25, %v242_v29  ;;  %v249_v40 = vmul.f32 %v246_v25, %v244_v33  ;;  %v199_v43 = vld [vmem:[%s501_s22 + $0x50] sm:$0xff]  ;;  %v200_v44 = vld [vmem:[%s501_s22 + $0x58] sm:$0x1] }
  0x1d   : > { %v234_v37 = vadd.f32 %v231_v24, %v210_v14  ;;  %v248_v39 = vmul.f32 %v246_v25, %v243_v31  ;;  %v261_v46 = vld [vmem:[%s260_s17] sm:$0xff]  ;;  %v262_v47 = vld [vmem:[%s260_s17 + $0x8] sm:$0xff]  ;;  %v263_v49 = vld [vmem:[%s260_s17 + $0x10] sm:$0x1]  ;;  %v217_v50 = vadd.f32 %v205_v4, %v198_v28  ;;  %s279_s21 = scalar_lea.vmem %s578_s5, %s278_s18  ;;  %v284_v57 = vstv %s527_s8 }
  0x1e   : > { %235 = vst [vmem:[%s540_s15] sm:$0xff] %v232_v35  ;;  %v250_v45 = vadd.f32 %v247_v38, %v211_v21  ;;  %v252_v52 = vadd.f32 %v249_v40, %v213_v32  ;;  %v266_v53 = vmul.f32 %v265_v41, %v261_v46  ;;  %v267_v54 = vmul.f32 %v265_v41, %v262_v47  ;;  %v280_v56 = vld [vmem:[%s279_s21] sm:$0xff]  ;;  %v281_v59 = vld [vmem:[%s279_s21 + $0x8] sm:$0xff]  ;;  %v282_v1 = vld [vmem:[%s279_s21 + $0x10] sm:$0x1] }
  0x1f   : > { %236 = vst [vmem:[%s540_s15 + $0x8] sm:$0xff] %v233_v36  ;;  %v251_v51 = vadd.f32 %v248_v39, %v212_v30  ;;  %v268_v55 = vmul.f32 %v265_v41, %v263_v49  ;;  %v218_v58 = vadd.f32 %v503_v5, %v199_v43  ;;  %v219_v60 = vadd.f32 %v505_v6, %v200_v44 }
  0x20   : > { %237 = vst [vmem:[%s540_s15 + $0x10] sm:$0x1] %v234_v37  ;;  %v269_v61 = vadd.f32 %v266_v53, %v214_v34  ;;  %v270_v62 = vadd.f32 %v267_v54, %v215_v42  ;;  %v285_v63 = vmul.f32 %v284_v57, %v280_v56  ;;  %v286_v0 = vmul.f32 %v284_v57, %v281_v59 }
  0x21   : > { %366 = vst [vmem:[%s540_s15 + $0x18] sm:$0xff] %v250_v45  ;;  %v271_v2 = vadd.f32 %v268_v55, %v216_v48  ;;  %v287_v3 = vmul.f32 %v284_v57, %v282_v1 }
  0x22   : > { %367 = vst [vmem:[%s540_s15 + $0x20] sm:$0xff] %v251_v51  ;;  %v288_v4 = vadd.f32 %v285_v63, %v217_v50  ;;  %v289_v5 = vadd.f32 %v286_v0, %v218_v58 }
  0x23   : > { %368 = vst [vmem:[%s540_s15 + $0x28] sm:$0x1] %v252_v52  ;;  %v290_v7 = vadd.f32 %v287_v3, %v219_v60 }
  0x24   : > { %369 = vst [vmem:[%s540_s15 + $0x30] sm:$0xff] %v269_v61 }
  0x25   : > { %370 = vst [vmem:[%s540_s15 + $0x38] sm:$0xff] %v270_v62 }
  0x26   : > { %371 = vst [vmem:[%s540_s15 + $0x40] sm:$0x1] %v271_v2 }
  0x27   : > { %372 = vst [vmem:[%s540_s15 + $0x48] sm:$0xff] %v288_v4 }
  0x28   : > { %373 = vst [vmem:[%s540_s15 + $0x50] sm:$0xff] %v289_v5 }
  0x29   : > { %374 = vst [vmem:[%s540_s15 + $0x58] sm:$0x1] %v290_v7 }
  0x2a PF: > { %s30_s7 = sadd.s32 1, %s420_s7  }
  0x2b   : > { %p27_p4 = scmp.ge.s32.totalorder %s30_s7, 4  }
  0x2d   :  { %29 = sbr.rel (!%p27_p4) target bundleno = 9 (0x9), region = 69 }

</bundles_post_ra>
